<compile_context>
chip_gen: v7x
topology: tpu7x:2x2x1
jax: 0.10.0
libtpu: 0.0.40
codegen_flags: <defaults>
</compile_context>

<pallas_src>
import jax
import jax.numpy as jnp
from jax.experimental import pallas as pl
from jax.experimental.pallas import tpu as pltpu


def _shift_crop_kernel(shift_ref, ck_ref, rk_ref, x_ref, out_ref):
    """Per-image shifted replicate-padded crop on lane-dense (C, H*W) slabs.

    shift_ref : SMEM (2, N) int32; row 0 = x-shift (cols), row 1 = y-shift (rows)
    ck_ref    : VMEM (2p+1, HW, HW) column-shift selectors  kron(I_H, csel_s)
    rk_ref    : VMEM (2p+1, HW, HW) row-shift selectors     kron(rsel_s, I_W)
    x_ref     : VMEM (Bn, C, HW) input block
    out_ref   : VMEM (Bn, C, HW) output block
    """
    blk = pl.program_id(0)
    bn = x_ref.shape[0]
    n_total = shift_ref.shape[1]

    def body(i, carry):
        # Clamp the global index so the (padded) tail block never reads the
        # SMEM shift table or the VMEM selector banks out of bounds; the
        # duplicate rows it produces are dropped by Pallas on writeback.
        g = jnp.minimum(blk * bn + i, n_total - 1)
        sx = shift_ref[0, g]                     # column shift
        sy = shift_ref[1, g]                     # row shift

        xi = x_ref[i].astype(ck_ref.dtype)       # (C, HW), lane-dense

        # Column shift (+ replicate clamp):  xi @ kron(I_H, csel[sx])
        y = jnp.dot(xi, ck_ref[sx], preferred_element_type=jnp.float32)
        # Row shift (+ replicate clamp):      y @ kron(rsel[sy], I_W)
        oi = jnp.dot(y.astype(ck_ref.dtype), rk_ref[sy],
                     preferred_element_type=jnp.float32)

        out_ref[i] = oi.astype(out_ref.dtype)
        return carry

    jax.lax.fori_loop(0, bn, body, 0, unroll=min(4, bn))


def _selector_banks(h, w, pad, dtype):
    """Kronecker-expanded clamped one-hot selectors for the flat (C, H*W) slab.

    ck[s] = kron(I_H, csel_s) applies the column shift via  x_flat @ ck[sx]
    rk[s] = kron(rsel_s, I_W) applies the row    shift via  y_flat @ rk[sy]
    where csel_s[r, j] = rsel_s[r, j] = 1 iff r == clamp(j + s - pad, 0, H-1).
    One-hot selection is exact, so the result matches the replicate-padded
    shifted crop bit-for-bit (values just pass through).
    """
    assert h == w
    S = 2 * pad + 1
    s = jnp.arange(S)[:, None]                               # (S, 1)
    dst = jnp.arange(h)[None, :]                             # (1, H)
    src = jnp.clip(dst + s - pad, 0, h - 1)                  # (S, H): source per dest
    # sel[s, r, d] = 1 iff r == clamp(d + s - pad, 0, H-1)
    sel = (jnp.arange(h)[None, :, None] == src[:, None, :]).astype(dtype)  # (S,H,H)
    eye = jnp.eye(h, dtype=dtype)
    ck = jax.vmap(lambda m: jnp.kron(eye, m))(sel)           # (S, H*W, H*W)
    rk = jax.vmap(lambda m: jnp.kron(m, eye))(sel)           # (S, H*W, H*W)
    return ck, rk


def random_shifts_aug(x, key, pad=4):
    """JAX/Pallas equivalent of RandomShiftsAug(pad).forward(x) for 4-D NCHW x."""
    n, c, h, w = x.shape
    assert h == w, "RandomShiftsAug requires square images"
    hw = h * w
    S = 2 * pad + 1

    # (2, N) int32: long axis last keeps the SMEM footprint near raw size.
    shifts = jax.random.randint(key, (2, n), 0, S, dtype=jnp.int32)

    # Build selectors in the input dtype when floating (exact for one-hot
    # selection; avoids casts on v5e's non-f32 MXU path for bf16 inputs).
    compute_dtype = x.dtype if jnp.issubdtype(x.dtype, jnp.floating) else jnp.float32
    ck, rk = _selector_banks(h, w, pad, compute_dtype)

    # ---- Per-generation VMEM budget and batch-block size --------------------
    sel_itemsize = jnp.dtype(compute_dtype).itemsize
    x_itemsize = jnp.dtype(x.dtype).itemsize
    sel_vmem = 2 * 2 * S * hw * hw * sel_itemsize        # two banks, double-buffered
    pad_c = -(-c // 8) * 8                               # sublane padding of (C, HW)
    pad_hw = -(-hw // 128) * 128                         # lane padding
    per_img = pad_c * pad_hw * x_itemsize                # one VMEM buffer per image

    try:
        vmem_cap = int(pltpu.get_tpu_info().vmem_capacity_bytes)
    except Exception:                                    # interpret mode / unknown chip
        vmem_cap = 128 * 1024 * 1024
    # ~48 MiB scoped on v7x (64 MiB physical), up to 96 MiB on v5e/v6e (128 MiB).
    vmem_limit = max(32 << 20, min(int(0.75 * vmem_cap), 96 << 20))
    headroom = 2 << 20

    if sel_vmem + 4 * per_img + headroom > vmem_limit:
        # TODO(synk): per-axis selector fallback for large images.
        raise NotImplementedError(
            "image too large for the Kronecker selector-bank kernel")

    budget = vmem_limit - sel_vmem - headroom
    bn = int(min(n, 1024, max(1, budget // (4 * per_img))))   # 2x in + 2x out buffers
    nb = -(-n // bn)                                          # ceil(N / bn)

    x_flat = x.reshape(n, c, hw)                              # free contiguous view

    grid_spec = pltpu.PrefetchScalarGridSpec(
        num_scalar_prefetch=1,
        grid=(nb,),
        in_specs=[
            # Selector banks: constant block index -> DMA'd to VMEM only once.
            pl.BlockSpec((S, hw, hw), lambda i, sft: (0, 0, 0)),
            pl.BlockSpec((S, hw, hw), lambda i, sft: (0, 0, 0)),
            pl.BlockSpec((bn, c, hw), lambda i, sft: (i, 0, 0)),
        ],
        out_specs=pl.BlockSpec((bn, c, hw), lambda i, sft: (i, 0, 0)),
    )

    out_flat = pl.pallas_call(
        _shift_crop_kernel,
        out_shape=jax.ShapeDtypeStruct((n, c, hw), x.dtype),
        grid_spec=grid_spec,
        compiler_params=pltpu.CompilerParams(
            dimension_semantics=("parallel",),       # distinct output block per step
            vmem_limit_bytes=vmem_limit,
        ),
    )(shifts, ck, rk, x_flat)

    return out_flat.reshape(n, c, h, w)


def _reference(x, key, pad=4):
    """Pure-JAX reference: shifted crop of the replicate-padded image."""
    n, c, h, w = x.shape
    xpad = jnp.pad(x, ((0, 0), (0, 0), (pad, pad), (pad, pad)), mode="edge")
    shifts = jax.random.randint(key, (2, n), 0, 2 * pad + 1, dtype=jnp.int32)

    def crop_one(img, sx, sy):
        return jax.lax.dynamic_slice(img, (0, sy, sx), (c, h, w))

    return jax.vmap(crop_one)(xpad, shifts[0], shifts[1])


if __name__ == "__main__":
    key = jax.random.PRNGKey(0)
    kx, ks = jax.random.split(key)

    # Small shapes consistent with the module: N=2, C=4, H=W=16, pad=4.
    x = jax.random.normal(kx, (2, 4, 16, 16), dtype=jnp.float32)

    out = random_shifts_aug(x, ks, pad=4)
    out = jax.block_until_ready(out)

    ref = _reference(x, ks, pad=4)
    assert out.shape == (2, 4, 16, 16)
    assert jnp.allclose(out, ref, atol=1e-5, rtol=1e-5)

    print("KERNEL_OK")
</pallas_src>

<mosaic_0001>
module attributes {stable_mosaic.version = 11 : i64} {
  func.func @_shift_crop_kernel(%arg0: i32, %arg1: memref<2x2xi32, #tpu.memory_space<smem>>, %arg2: memref<9x256x256xf32, #tpu.memory_space<vmem>>, %arg3: memref<9x256x256xf32, #tpu.memory_space<vmem>>, %arg4: memref<2x4x256xf32, #tpu.memory_space<vmem>>, %arg5: memref<2x4x256xf32, #tpu.memory_space<vmem>>) attributes {dimension_semantics = [#tpu.dimension_semantics<parallel>], iteration_bounds = array<i64: 1>, scalar_prefetch = 1 : i64, scratch_operands = 0 : i64, tpu.core_type = #tpu.core_type<tc>, window_params = [{pipeline_mode = #tpu.pipeline_mode<synchronous>, transform_indices = @transform_0, window_bounds = array<i64: 9, 256, 256>}, {pipeline_mode = #tpu.pipeline_mode<synchronous>, transform_indices = @transform_1, window_bounds = array<i64: 9, 256, 256>}, {transform_indices = @transform_2, window_bounds = array<i64: 2, 4, 256>}, {transform_indices = @transform_3, window_bounds = array<i64: 2, 4, 256>}]} {
    %c0_i32 = arith.constant 0 : i32
    %c2_i32 = arith.constant 2 : i32
    %0 = arith.muli %arg0, %c2_i32 : i32
    %1 = arith.addi %0, %c0_i32 : i32
    %c1_i32 = arith.constant 1 : i32
    %2 = arith.minsi %1, %c1_i32 : i32
    %c0 = arith.constant 0 : index
    %3 = arith.index_cast %2 : i32 to index
    %4 = memref.load %arg1[%c0, %3] : memref<2x2xi32, #tpu.memory_space<smem>>
    %c1 = arith.constant 1 : index
    %5 = arith.index_cast %2 : i32 to index
    %6 = memref.load %arg1[%c1, %5] : memref<2x2xi32, #tpu.memory_space<smem>>
    %7 = arith.index_cast %c0_i32 : i32 to index
    %c0_0 = arith.constant 0 : index
    %c0_1 = arith.constant 0 : index
    %8 = vector.load %arg4[%7, %c0_0, %c0_1] : memref<2x4x256xf32, #tpu.memory_space<vmem>>, vector<1x4x256xf32>
    %9 = vector.shape_cast %8 : vector<1x4x256xf32> to vector<4x256xf32>
    %10 = arith.index_cast %4 : i32 to index
    %c0_2 = arith.constant 0 : index
    %c0_3 = arith.constant 0 : index
    %11 = vector.load %arg2[%10, %c0_2, %c0_3] : memref<9x256x256xf32, #tpu.memory_space<vmem>>, vector<1x256x256xf32>
    %12 = vector.shape_cast %11 : vector<1x256x256xf32> to vector<256x256xf32>
    %cst = arith.constant dense<0.000000e+00> : vector<4x256xf32>
    %13 = tpu.matmul %9, %12, %cst {dimension_numbers = #tpu.dot_dimension_numbers<[1], [0], [0], [1], [0, 0, 1, 1], [], []>} : vector<4x256xf32>, vector<256x256xf32>, vector<4x256xf32> -> vector<4x256xf32>
    %14 = arith.index_cast %6 : i32 to index
    %c0_4 = arith.constant 0 : index
    %c0_5 = arith.constant 0 : index
    %15 = vector.load %arg3[%14, %c0_4, %c0_5] : memref<9x256x256xf32, #tpu.memory_space<vmem>>, vector<1x256x256xf32>
    %16 = vector.shape_cast %15 : vector<1x256x256xf32> to vector<256x256xf32>
    %cst_6 = arith.constant dense<0.000000e+00> : vector<4x256xf32>
    %17 = tpu.matmul %13, %16, %cst_6 {dimension_numbers = #tpu.dot_dimension_numbers<[1], [0], [0], [1], [0, 0, 1, 1], [], []>} : vector<4x256xf32>, vector<256x256xf32>, vector<4x256xf32> -> vector<4x256xf32>
    %18 = arith.index_cast %c0_i32 : i32 to index
    %c0_7 = arith.constant 0 : index
    %c0_8 = arith.constant 0 : index
    %19 = vector.load %arg5[%18, %c0_7, %c0_8] : memref<2x4x256xf32, #tpu.memory_space<vmem>>, vector<1x4x256xf32>
    %20 = vector.shape_cast %19 : vector<1x4x256xf32> to vector<4x256xf32>
    %21 = vector.shape_cast %17 : vector<4x256xf32> to vector<1x4x256xf32>
    tpu.vector_store %arg5[%18, %c0_7, %c0_8], %21 {strides = array<i32>} : memref<2x4x256xf32, #tpu.memory_space<vmem>>, vector<1x4x256xf32>,
    %c1_i32_9 = arith.constant 1 : i32
    %c2_i32_10 = arith.constant 2 : i32
    %22 = arith.muli %arg0, %c2_i32_10 : i32
    %23 = arith.addi %22, %c1_i32_9 : i32
    %c1_i32_11 = arith.constant 1 : i32
    %24 = arith.minsi %23, %c1_i32_11 : i32
    %c0_12 = arith.constant 0 : index
    %25 = arith.index_cast %24 : i32 to index
    %26 = memref.load %arg1[%c0_12, %25] : memref<2x2xi32, #tpu.memory_space<smem>>
    %c1_13 = arith.constant 1 : index
    %27 = arith.index_cast %24 : i32 to index
    %28 = memref.load %arg1[%c1_13, %27] : memref<2x2xi32, #tpu.memory_space<smem>>
    %29 = arith.index_cast %c1_i32_9 : i32 to index
    %c0_14 = arith.constant 0 : index
    %c0_15 = arith.constant 0 : index
    %30 = vector.load %arg4[%29, %c0_14, %c0_15] : memref<2x4x256xf32, #tpu.memory_space<vmem>>, vector<1x4x256xf32>
    %31 = vector.shape_cast %30 : vector<1x4x256xf32> to vector<4x256xf32>
    %32 = arith.index_cast %26 : i32 to index
    %c0_16 = arith.constant 0 : index
    %c0_17 = arith.constant 0 : index
    %33 = vector.load %arg2[%32, %c0_16, %c0_17] : memref<9x256x256xf32, #tpu.memory_space<vmem>>, vector<1x256x256xf32>
    %34 = vector.shape_cast %33 : vector<1x256x256xf32> to vector<256x256xf32>
    %cst_18 = arith.constant dense<0.000000e+00> : vector<4x256xf32>
    %35 = tpu.matmul %31, %34, %cst_18 {dimension_numbers = #tpu.dot_dimension_numbers<[1], [0], [0], [1], [0, 0, 1, 1], [], []>} : vector<4x256xf32>, vector<256x256xf32>, vector<4x256xf32> -> vector<4x256xf32>
    %36 = arith.index_cast %28 : i32 to index
    %c0_19 = arith.constant 0 : index
    %c0_20 = arith.constant 0 : index
    %37 = vector.load %arg3[%36, %c0_19, %c0_20] : memref<9x256x256xf32, #tpu.memory_space<vmem>>, vector<1x256x256xf32>
    %38 = vector.shape_cast %37 : vector<1x256x256xf32> to vector<256x256xf32>
    %cst_21 = arith.constant dense<0.000000e+00> : vector<4x256xf32>
    %39 = tpu.matmul %35, %38, %cst_21 {dimension_numbers = #tpu.dot_dimension_numbers<[1], [0], [0], [1], [0, 0, 1, 1], [], []>} : vector<4x256xf32>, vector<256x256xf32>, vector<4x256xf32> -> vector<4x256xf32>
    %40 = arith.index_cast %c1_i32_9 : i32 to index
    %c0_22 = arith.constant 0 : index
    %c0_23 = arith.constant 0 : index
    %41 = vector.load %arg5[%40, %c0_22, %c0_23] : memref<2x4x256xf32, #tpu.memory_space<vmem>>, vector<1x4x256xf32>
    %42 = vector.shape_cast %41 : vector<1x4x256xf32> to vector<4x256xf32>
    %43 = vector.shape_cast %39 : vector<4x256xf32> to vector<1x4x256xf32>
    tpu.vector_store %arg5[%40, %c0_22, %c0_23], %43 {strides = array<i32>} : memref<2x4x256xf32, #tpu.memory_space<vmem>>, vector<1x4x256xf32>,
    %c2_i32_24 = arith.constant 2 : i32
    return
  }
  func.func @transform_0(%arg0: i32, %arg1: memref<2x2xi32, #tpu.memory_space<smem>>) -> (i32, i32, i32) {
    %c0_i32 = arith.constant 0 : i32
    %c0_i32_0 = arith.constant 0 : i32
    %c0_i32_1 = arith.constant 0 : i32
    %c0_i32_2 = arith.constant 0 : i32
    return %c0_i32, %c0_i32_0, %c0_i32_1 : i32, i32, i32
  }
  func.func @transform_1(%arg0: i32, %arg1: memref<2x2xi32, #tpu.memory_space<smem>>) -> (i32, i32, i32) {
    %c0_i32 = arith.constant 0 : i32
    %c0_i32_0 = arith.constant 0 : i32
    %c0_i32_1 = arith.constant 0 : i32
    %c0_i32_2 = arith.constant 0 : i32
    return %c0_i32, %c0_i32_0, %c0_i32_1 : i32, i32, i32
  }
  func.func @transform_2(%arg0: i32, %arg1: memref<2x2xi32, #tpu.memory_space<smem>>) -> (i32, i32, i32) {
    %c0_i32 = arith.constant 0 : i32
    %c0_i32_0 = arith.constant 0 : i32
    %c0_i32_1 = arith.constant 0 : i32
    return %arg0, %c0_i32, %c0_i32_0 : i32, i32, i32
  }
  func.func @transform_3(%arg0: i32, %arg1: memref<2x2xi32, #tpu.memory_space<smem>>) -> (i32, i32, i32) {
    %c0_i32 = arith.constant 0 : i32
    %c0_i32_0 = arith.constant 0 : i32
    %c0_i32_1 = arith.constant 0 : i32
    return %arg0, %c0_i32, %c0_i32_0 : i32, i32, i32
  }
}

</mosaic_0001>

<bundles_post_ra>
// kernel: tpu_custom_call.1
= control target key start
LH: loop header
LB: loop body
LE: loop exit
PB: predicated region body
PF: predicated region fallthrough
CT: control target
= control target key end

     0   :  { %s1458_s0 = inlined_call_operand.hbm [shape: s32[2,2], index: 0, kind: input, shape index: {}]   ;;  %s1459_s1 = inlined_call_operand.hbm [shape: f32[9,256,256], index: 1, kind: input, shape index: {}]   ;;  %s1460_s2 = inlined_call_operand.hbm [shape: f32[9,256,256], index: 2, kind: input, shape index: {}]   ;;  %s1461_s3 = inlined_call_operand.hbm [shape: f32[2,4,256], index: 3, kind: input, shape index: {}]   ;;  %s1462_s4 = inlined_call_operand.hbm [shape: f32[2,4,256], index: 4, kind: output, shape index: {}]  }
   0x1   :  { %s965_s17 = scalar_lea.hbm %s1458_s0, 32 }
   0x2   :  { %p966_p0 = scmp.ne.s32.totalorder %s1458_s0, %s965_s17  ;;  %p969_p1 = scmp.lt.u32.totalorder %s965_s17, %s1458_s0 }
   0x4   :  { %p971_p2 = pnand %p969_p1, %p966_p0 }
   0x6   :  { %974 = shalt.err (!%p971_p2)  }
   0x7   :  { %s1071_s22 = smov [#allocation3]  }
   0x8   :  { %10 = dma.hbm_to_smem %s1458_s0, 32, %s1071_s22, [#allocation2] }
   0x9   :  { %1063 = dma.done.wait [#allocation2], 32 }
   0xa   :  { %1064 = vsyncadd [#allocation2], 4294967264 }
   0xb   :  { %12 = sfence }
   0xc   :  { %13 = vsyncpa [#allocation5], 0 }
   0xd   :  { %14 = vsyncpa [#allocation8], 0 }
   0xe   :  { %15 = vsyncpa [#allocation6], 0  ;;  %s1072_s25 = smov [#allocation7]   ;;  %s1073_s27 = smov [#allocation4]  }
   0xf   :  { %s33_s26 = sshll.u32 %s1072_s25, 4  ;;  %s21_s28 = sshll.u32 %s1073_s27, 4  ;;  %s34_s26 = int_to_ptr.vmem [resolvable:$true] %s33_s26  ;;  %s1117_s28 = int_to_ptr.vmem [resolvable:$true] %s21_s28 }
  0x10   :  { %s975_s5 = scalar_lea.hbm %s1460_s2, 73728 }
  0x11   :  { %p976_p3 = scmp.ne.s32.totalorder %s1460_s2, %s975_s5  ;;  %p979_p4 = scmp.lt.u32.totalorder %s975_s5, %s1460_s2 }
  0x13   :  { %p981_p5 = pnand %p979_p4, %p976_p3 }
  0x15   :  { %984 = shalt.err (!%p981_p5)
}
  0x16   :  { %s985_s9 = scalar_lea.vmem %s34_s26, 73728  ;;  %p990_p7 = scmp.lt.s32.totalorder %s34_s26, %s34_s26 }
  0x17   :  { %p986_p6 = scmp.ne.s32.totalorder %s34_s26, %s985_s9  ;;  %p991_p8 = scmp.lt.s32.totalorder %s985_s9, %s985_s9 }
  0x19   :  { %p992_p9 = por %p991_p8, %p990_p7 }
  0x1b   :  { %p993_p10 = pnand %p992_p9, %p986_p6 }
  0x1d   :  { %996 = shalt.err (!%p993_p10)
}
  0x1e   :  { %s1074_s10 = smov 256   ;;  %s1075_s11 = smov 16  }
  0x1f   :  { %39 = dma.hbm_to_vmem [thread:$0]  %s1460_s2, 73728, %s34_s26, [#allocation8], %s1074_s10, %s1074_s10, %s1075_s11  }
  0x20   :  { %s997_s16 = scalar_lea.hbm %s1459_s1, 73728 }
  0x21   :  { %p998_p11 = scmp.ne.s32.totalorder %s1459_s1, %s997_s16  ;;  %p1001_p12 = scmp.lt.u32.totalorder %s997_s16, %s1459_s1 }
  0x23   :  { %p1003_p13 = pnand %p1001_p12, %p998_p11 }
  0x25   :  { %1006 = shalt.err (!%p1003_p13)
}
  0x26   :  { %s1007_s21 = scalar_lea.vmem %s1117_s28, 73728  ;;  %p1012_p1 = scmp.lt.s32.totalorder %s1117_s28, %s1117_s28 }
  0x27   :  { %p1008_p0 = scmp.ne.s32.totalorder %s1117_s28, %s1007_s21  ;;  %p1013_p2 = scmp.lt.s32.totalorder %s1007_s21, %s1007_s21 }
  0x29   :  { %p1014_p3 = por %p1013_p2, %p1012_p1 }
  0x2b   :  { %p1015_p4 = pnand %p1014_p3, %p1008_p0 }
  0x2d   :  { %1018 = shalt.err (!%p1015_p4)
}
  0x2e   :  { %27 = dma.hbm_to_vmem [thread:$0]  %s1459_s1, 73728, %s1117_s28, [#allocation5], %s1074_s10, %s1074_s10, %s1075_s11  }
  0x2f   :  { %s1076_s23 = smov [#allocation9]   ;;  %s1019_s27 = scalar_lea.hbm %s1461_s3, 256 }
  0x30   :  { %s45_s24 = sshll.u32 %s1076_s23, 4  ;;  %p1020_p5 = scmp.ne.s32.totalorder %s1461_s3, %s1019_s27  ;;  %s46_s24 = int_to_ptr.vmem [resolvable:$true] %s45_s24 }
  0x31   :  { %p1023_p6 = scmp.lt.u32.totalorder %s1019_s27, %s1461_s3 }
  0x33   :  { %p1025_p7 = pnand %p1023_p6, %p1020_p5 }
  0x35   :  { %1028 = shalt.err (!%p1025_p7)
}
  0x36   :  { %s1029_s7 = scalar_lea.vmem %s46_s24, 256  ;;  %p1034_p9 = scmp.lt.s32.totalorder %s46_s24, %s46_s24 }
  0x37   :  { %p1030_p8 = scmp.ne.s32.totalorder %s46_s24, %s1029_s7  ;;  %p1035_p10 = scmp.lt.s32.totalorder %s1029_s7, %s1029_s7 }
  0x39   :  { %p1036_p11 = por %p1035_p10, %p1034_p9 }
  0x3b   :  { %p1037_p12 = pnand %p1036_p11, %p1030_p8 }
  0x3d   :  { %1040 = shalt.err (!%p1037_p12)
}
  0x3e   :  { %s1077_s1 = smov 128   ;;  %s1078_s28 = smov 8  }
  0x3f   :  { %51 = dma.hbm_to_vmem [thread:$0]  %s1461_s3, 256, %s46_s24, [#allocation8], %s1077_s1, %s1077_s1, %s1078_s28  }
  0x40   :  { %1065 = dma.done.wait [#allocation5], 73728  }
  0x41   :  { %1066 = vsyncadd [#allocation5], 4294893568 }
  0x42   :  { %1067 = dma.done.wait [#allocation8], 73984  }
  0x43   :  { %1068 = vsyncadd [#allocation8], 4294893312  ;;  %s64_s9 = sld [smem:[#allocation3]]  ;;  %v1163_v0 = vld [vmem:[#allocation9] sm:$0xff]  ;;  %s1230_s14 = sld [smem:[#allocation3 + $0x1]] }
  0x44   :  { %v142_v1 = vcombine.high %v1163_v0, %v1163_v0  ;;  %s1203_s3 = sld [smem:[#allocation3 + $0x80]]  ;;  %s689_s17 = sld [smem:[#allocation3 + $0x81]] }
  0x45   :  { %s1079_s20 = smov [#allocation10]  }
  0x46   :  { %208 = vmatprep.mubr.f32.mxu0 %v142_v1  ;;  %s662_s21 = sshll.u32 %s1079_s20, 4  ;;  %s663_s21 = int_to_ptr.vmem [resolvable:$true] %s662_s21 }
  0x47   :  { %s1041_s2 = scalar_lea.vmem %s663_s21, 256  ;;  %p1046_p0 = scmp.lt.s32.totalorder %s663_s21, %s663_s21 }
  0x48   :  { %p1042_p13 = scmp.ne.s32.totalorder %s663_s21, %s1041_s2  ;;  %p1047_p1 = scmp.lt.s32.totalorder %s1041_s2, %s1041_s2 }
  0x49   :  { %s694_s10 = sshll.u32 %s64_s9, 9  ;;  %s696_s15 = sshll.u32 %s1230_s14, 9 }
  0x4a   :  { %s1167_s11 = scalar_lea.vmem [#allocation4], %s694_s10  ;;  %s695_s12 = sshll.u32 %s1203_s3, 9 }
  0x4b   :  { %v78_v2 = vld [vmem:[%s1167_s11 + $0x8] sm:$0xff]  ;;  %v80_v3 = vld [vmem:[%s1167_s11 + $0x18] sm:$0xff]  ;;  %v77_v4 = vld [vmem:[%s1167_s11] sm:$0xff]  ;;  %s1222_s13 = scalar_lea.vmem [#allocation7], %s695_s12  ;;  %s1263_s16 = scalar_lea.vmem [#allocation4], %s696_s15 }
  0x4c   :  { %v698_v5 = vpack.c.bf16 %v80_v3, %v78_v2  ;;  %v79_v6 = vld [vmem:[%s1167_s11 + $0x10] sm:$0xff]  ;;  %v82_v7 = vld [vmem:[%s1167_s11 + $0x28] sm:$0xff]  ;;  %v84_v8 = vld [vmem:[%s1167_s11 + $0x38] sm:$0xff]  ;;  %s697_s18 = sshll.u32 %s689_s17, 9  ;;  %p1048_p2 = por %p1047_p1, %p1046_p0 }
  0x4d   :  { %v700_v9 = vpack.c.bf16 %v79_v6, %v77_v4  ;;  %v702_v10 = vpack.c.bf16 %v84_v8, %v82_v7  ;;  %v81_v11 = vld [vmem:[%s1167_s11 + $0x20] sm:$0xff]  ;;  %v83_v12 = vld [vmem:[%s1167_s11 + $0x30] sm:$0xff]  ;;  %v86_v13 = vld [vmem:[%s1167_s11 + $0x48] sm:$0xff]  ;;  %s1377_s19 = scalar_lea.vmem [#allocation7], %s697_s18 }
  0x4e   :  { %699 = vmatprep.subr.bf16.mxu0 %v698_v5  ;;  %v88_v14 = vld [vmem:[%s1167_s11 + $0x58] sm:$0xff]  ;;  %v704_v15 = vpack.c.bf16 %v83_v12, %v81_v11  ;;  %v85_v17 = vld [vmem:[%s1167_s11 + $0x40] sm:$0xff]  ;;  %v87_v18 = vld [vmem:[%s1167_s11 + $0x50] sm:$0xff]  ;;  %p1049_p3 = pnand %p1048_p2, %p1042_p13 }
  0x4f   :  { %701 = vmatpush1.bf16.msra.mxu0 %v700_v9  ;;  %v706_v16 = vpack.c.bf16 %v88_v14, %v86_v13  ;;  %v90_v19 = vld [vmem:[%s1167_s11 + $0x68] sm:$0xff]  ;;  %v92_v20 = vld [vmem:[%s1167_s11 + $0x78] sm:$0xff]  ;;  %v708_v21 = vpack.c.bf16 %v87_v18, %v85_v17  ;;  %v89_v23 = vld [vmem:[%s1167_s11 + $0x60] sm:$0xff] }
  0x50   :  { %703 = vmatprep.subr.bf16.mxu0 %v702_v10  ;;  %v710_v22 = vpack.c.bf16 %v92_v20, %v90_v19  ;;  %v91_v24 = vld [vmem:[%s1167_s11 + $0x70] sm:$0xff]  ;;  %v94_v25 = vld [vmem:[%s1167_s11 + $0x88] sm:$0xff]  ;;  %v96_v26 = vld [vmem:[%s1167_s11 + $0x98] sm:$0xff] }
  0x51   :  { %v712_v27 = vpack.c.bf16 %v91_v24, %v89_v23  ;;  %v714_v28 = vpack.c.bf16 %v96_v26, %v94_v25  ;;  %v93_v29 = vld [vmem:[%s1167_s11 + $0x80] sm:$0xff]  ;;  %v95_v30 = vld [vmem:[%s1167_s11 + $0x90] sm:$0xff]  ;;  %v98_v31 = vld [vmem:[%s1167_s11 + $0xa8] sm:$0xff] }
  0x52   :  { %v100_v32 = vld [vmem:[%s1167_s11 + $0xb8] sm:$0xff]  ;;  %v716_v33 = vpack.c.bf16 %v95_v30, %v93_v29  ;;  %v97_v35 = vld [vmem:[%s1167_s11 + $0xa0] sm:$0xff]  ;;  %v99_v36 = vld [vmem:[%s1167_s11 + $0xb0] sm:$0xff] }
  0x53   :  { %705 = vmatpush1.bf16.msra.mxu0 %v704_v15  ;;  %v718_v34 = vpack.c.bf16 %v100_v32, %v98_v31  ;;  %v102_v37 = vld [vmem:[%s1167_s11 + $0xc8] sm:$0xff]  ;;  %v104_v38 = vld [vmem:[%s1167_s11 + $0xd8] sm:$0xff]  ;;  %v720_v39 = vpack.c.bf16 %v99_v36, %v97_v35  ;;  %v101_v41 = vld [vmem:[%s1167_s11 + $0xc0] sm:$0xff] }
  0x54   :  { %707 = vmatprep.subr.bf16.mxu0 %v706_v16  ;;  %v722_v40 = vpack.c.bf16 %v104_v38, %v102_v37  ;;  %v103_v42 = vld [vmem:[%s1167_s11 + $0xd0] sm:$0xff]  ;;  %v106_v43 = vld [vmem:[%s1167_s11 + $0xe8] sm:$0xff]  ;;  %v108_v44 = vld [vmem:[%s1167_s11 + $0xf8] sm:$0xff] }
  0x55   :  { %v724_v45 = vpack.c.bf16 %v103_v42, %v101_v41  ;;  %v726_v46 = vpack.c.bf16 %v108_v44, %v106_v43  ;;  %v105_v47 = vld [vmem:[%s1167_s11 + $0xe0] sm:$0xff]  ;;  %v107_v48 = vld [vmem:[%s1167_s11 + $0xf0] sm:$0xff]  ;;  %v110_v49 = vld [vmem:[%s1167_s11 + $0x108] sm:$0xff] }
  0x56   :  { %v112_v50 = vld [vmem:[%s1167_s11 + $0x118] sm:$0xff]  ;;  %v728_v51 = vpack.c.bf16 %v107_v48, %v105_v47  ;;  %v109_v53 = vld [vmem:[%s1167_s11 + $0x100] sm:$0xff]  ;;  %v111_v54 = vld [vmem:[%s1167_s11 + $0x110] sm:$0xff] }
  0x57   :  { %709 = vmatpush1.bf16.msra.mxu0 %v708_v21  ;;  %v730_v52 = vpack.c.bf16 %v112_v50, %v110_v49  ;;  %v114_v55 = vld [vmem:[%s1167_s11 + $0x128] sm:$0xff]  ;;  %v116_v56 = vld [vmem:[%s1167_s11 + $0x138] sm:$0xff]  ;;  %v732_v57 = vpack.c.bf16 %v111_v54, %v109_v53  ;;  %v113_v59 = vld [vmem:[%s1167_s11 + $0x120] sm:$0xff] }
  0x58   :  { %711 = vmatprep.subr.bf16.mxu0 %v710_v22  ;;  %v734_v58 = vpack.c.bf16 %v116_v56, %v114_v55  ;;  %v115_v60 = vld [vmem:[%s1167_s11 + $0x130] sm:$0xff]  ;;  %v118_v61 = vld [vmem:[%s1167_s11 + $0x148] sm:$0xff]  ;;  %v120_v62 = vld [vmem:[%s1167_s11 + $0x158] sm:$0xff] }
  0x59   :  { %v736_v63 = vpack.c.bf16 %v115_v60, %v113_v59  ;;  %v738_v1 = vpack.c.bf16 %v120_v62, %v118_v61  ;;  %v117_v2 = vld [vmem:[%s1167_s11 + $0x140] sm:$0xff]  ;;  %v119_v3 = vld [vmem:[%s1167_s11 + $0x150] sm:$0xff]  ;;  %v122_v4 = vld [vmem:[%s1167_s11 + $0x168] sm:$0xff] }
  0x5a   :  { %v124_v5 = vld [vmem:[%s1167_s11 + $0x178] sm:$0xff]  ;;  %v740_v6 = vpack.c.bf16 %v119_v3, %v117_v2  ;;  %v121_v8 = vld [vmem:[%s1167_s11 + $0x160] sm:$0xff]  ;;  %v123_v9 = vld [vmem:[%s1167_s11 + $0x170] sm:$0xff] }
  0x5b   :  { %713 = vmatpush1.bf16.msra.mxu0 %v712_v27  ;;  %v742_v7 = vpack.c.bf16 %v124_v5, %v122_v4  ;;  %v126_v10 = vld [vmem:[%s1167_s11 + $0x188] sm:$0xff]  ;;  %v128_v11 = vld [vmem:[%s1167_s11 + $0x198] sm:$0xff]  ;;  %v125_v13 = vld [vmem:[%s1167_s11 + $0x180] sm:$0xff]  ;;  %v744_v18 = vpack.c.bf16 %v123_v9, %v121_v8 }
  0x5c   :  { %715 = vmatprep.subr.bf16.mxu0 %v714_v28  ;;  %v219_v12 = vld [vmem:[%s1222_s13 + $0x8] sm:$0xff]  ;;  %v127_v14 = vld [vmem:[%s1167_s11 + $0x190] sm:$0xff]  ;;  %v221_v15 = vld [vmem:[%s1222_s13 + $0x18] sm:$0xff]  ;;  %v746_v24 = vpack.c.bf16 %v128_v11, %v126_v10 }
  0x5d   :  { %v218_v16 = vld [vmem:[%s1222_s13] sm:$0xff]  ;;  %v220_v17 = vld [vmem:[%s1222_s13 + $0x10] sm:$0xff]  ;;  %v762_v19 = vpack.c.bf16 %v221_v15, %v219_v12  ;;  %v223_v21 = vld [vmem:[%s1222_s13 + $0x28] sm:$0xff]  ;;  %v748_v32 = vpack.c.bf16 %v127_v14, %v125_v13 }
  0x5e   :  { %v764_v20 = vpack.c.bf16 %v220_v17, %v218_v16  ;;  %v225_v22 = vld [vmem:[%s1222_s13 + $0x38] sm:$0xff]  ;;  %v222_v23 = vld [vmem:[%s1222_s13 + $0x20] sm:$0xff]  ;;  %v224_v26 = vld [vmem:[%s1222_s13 + $0x30] sm:$0xff] }
  0x5f   :  { %717 = vmatpush1.bf16.msra.mxu0 %v716_v33  ;;  %v766_v25 = vpack.c.bf16 %v225_v22, %v223_v21  ;;  %v227_v27 = vld [vmem:[%s1222_s13 + $0x48] sm:$0xff]  ;;  %v229_v28 = vld [vmem:[%s1222_s13 + $0x58] sm:$0xff]  ;;  %763 = vmatprep.subr.bf16.mxu1 %v762_v19  ;;  %v768_v31 = vpack.c.bf16 %v224_v26, %v222_v23  ;;  %v129_v33 = vld [vmem:[%s1167_s11 + $0x1a0] sm:$0xff] }
  0x60   :  { %719 = vmatprep.subr.bf16.mxu0 %v718_v34  ;;  %v130_v29 = vld [vmem:[%s1167_s11 + $0x1a8] sm:$0xff]  ;;  %v132_v30 = vld [vmem:[%s1167_s11 + $0x1b8] sm:$0xff]  ;;  %765 = vmatpush1.bf16.msra.mxu1 %v764_v20  ;;  %v770_v34 = vpack.c.bf16 %v229_v28, %v227_v27  ;;  %v226_v35 = vld [vmem:[%s1222_s13 + $0x40] sm:$0xff] }
  0x61   :  { %767 = vmatprep.subr.bf16.mxu1 %v766_v25  ;;  %v228_v36 = vld [vmem:[%s1222_s13 + $0x50] sm:$0xff]  ;;  %v750_v37 = vpack.c.bf16 %v132_v30, %v130_v29  ;;  %v134_v41 = vld [vmem:[%s1167_s11 + $0x1c8] sm:$0xff]  ;;  %v136_v42 = vld [vmem:[%s1167_s11 + $0x1d8] sm:$0xff] }
  0x62   :  { %v131_v38 = vld [vmem:[%s1167_s11 + $0x1b0] sm:$0xff]  ;;  %v772_v43 = vpack.c.bf16 %v228_v36, %v226_v35  ;;  %v230_v47 = vld [vmem:[%s1222_s13 + $0x60] sm:$0xff]  ;;  %v754_v49 = vpack.c.bf16 %v136_v42, %v134_v41  ;;  %v138_v53 = vld [vmem:[%s1167_s11 + $0x1e8] sm:$0xff] }
  0x63   :  { %721 = vmatpush1.bf16.msra.mxu0 %v720_v39  ;;  %v231_v39 = vld [vmem:[%s1222_s13 + $0x68] sm:$0xff]  ;;  %v752_v44 = vpack.c.bf16 %v131_v38, %v129_v33  ;;  %v232_v48 = vld [vmem:[%s1222_s13 + $0x70] sm:$0xff]  ;;  %v140_v54 = vld [vmem:[%s1167_s11 + $0x1f8] sm:$0xff] }
  0x64   :  { %723 = vmatprep.subr.bf16.mxu0 %v722_v40  ;;  %v233_v40 = vld [vmem:[%s1222_s13 + $0x78] sm:$0xff]  ;;  %769 = vmatpush1.bf16.msra.mxu1 %v768_v31  ;;  %v135_v50 = vld [vmem:[%s1167_s11 + $0x1d0] sm:$0xff]  ;;  %v776_v55 = vpack.c.bf16 %v232_v48, %v230_v47  ;;  %v234_v59 = vld [vmem:[%s1222_s13 + $0x80] sm:$0xff]  ;;  %v758_v61 = vpack.c.bf16 %v140_v54, %v138_v53 }
  0x65   :  { %771 = vmatprep.subr.bf16.mxu1 %v770_v34  ;;  %v236_v60 = vld [vmem:[%s1222_s13 + $0x90] sm:$0xff]  ;;  %v376_v2 = vld [vmem:[%s1263_s16 + $0x8] sm:$0xff]  ;;  %v378_v3 = vld [vmem:[%s1263_s16 + $0x18] sm:$0xff] }
  0x66   :  { %v139_v62 = vld [vmem:[%s1167_s11 + $0x1f0] sm:$0xff]  ;;  %v780_v4 = vpack.c.bf16 %v236_v60, %v234_v59  ;;  %v238_v8 = vld [vmem:[%s1222_s13 + $0xa0] sm:$0xff]  ;;  %v826_v10 = vpack.c.bf16 %v378_v3, %v376_v2  ;;  %v380_v13 = vld [vmem:[%s1263_s16 + $0x28] sm:$0xff] }
  0x67   :  { %725 = vmatpush1.bf16.msra.mxu0 %v724_v45  ;;  %v133_v45 = vld [vmem:[%s1167_s11 + $0x1c0] sm:$0xff]  ;;  %v240_v9 = vld [vmem:[%s1222_s13 + $0xb0] sm:$0xff]  ;;  %v382_v14 = vld [vmem:[%s1263_s16 + $0x38] sm:$0xff] }
  0x68   :  { %727 = vmatprep.subr.bf16.mxu0 %v726_v46  ;;  %v774_v46 = vpack.c.bf16 %v233_v40, %v231_v39  ;;  %773 = vmatpush1.bf16.msra.mxu1 %v772_v43  ;;  %v756_v56 = vpack.c.bf16 %v135_v50, %v133_v45  ;;  %v375_v11 = vld [vmem:[%s1263_s16] sm:$0xff]  ;;  %v377_v12 = vld [vmem:[%s1263_s16 + $0x10] sm:$0xff]  ;;  %v243_v15 = vld [vmem:[%s1222_s13 + $0xc8] sm:$0xff]  ;;  %v784_v17 = vpack.c.bf16 %v240_v9, %v238_v8 }
  0x69   :  { %v245_v16 = vld [vmem:[%s1222_s13 + $0xd8] sm:$0xff]  ;;  %v379_v19 = vld [vmem:[%s1263_s16 + $0x20] sm:$0xff]  ;;  %v244_v22 = vld [vmem:[%s1222_s13 + $0xd0] sm:$0xff]  ;;  %v830_v23 = vpack.c.bf16 %v382_v14, %v380_v13 }
  0x6a   :  { %775 = vmatprep.subr.bf16.mxu1 %v774_v46  ;;  %v242_v21 = vld [vmem:[%s1222_s13 + $0xc0] sm:$0xff]  ;;  %v786_v25 = vpack.c.bf16 %v245_v16, %v243_v15  ;;  %v247_v26 = vld [vmem:[%s1222_s13 + $0xe8] sm:$0xff]  ;;  %v249_v27 = vld [vmem:[%s1222_s13 + $0xf8] sm:$0xff] }
  0x6b   :  { %729 = vmatpush1.bf16.msra.mxu0 %v728_v51  ;;  %v235_v51 = vld [vmem:[%s1222_s13 + $0x88] sm:$0xff]  ;;  %v386_v29 = vld [vmem:[%s1263_s16 + $0x58] sm:$0xff]  ;;  %v788_v30 = vpack.c.bf16 %v244_v22, %v242_v21  ;;  %v790_v33 = vpack.c.bf16 %v249_v27, %v247_v26  ;;  %v246_v34 = vld [vmem:[%s1222_s13 + $0xe0] sm:$0xff] }
  0x6c   :  { %731 = vmatprep.subr.bf16.mxu0 %v730_v52  ;;  %v237_v52 = vld [vmem:[%s1222_s13 + $0x98] sm:$0xff]  ;;  %777 = vmatpush1.bf16.msra.mxu1 %v776_v55  ;;  %v384_v28 = vld [vmem:[%s1263_s16 + $0x48] sm:$0xff]  ;;  %v248_v35 = vld [vmem:[%s1222_s13 + $0xf0] sm:$0xff] }
  0x6d   :  { %v834_v36 = vpack.c.bf16 %v386_v29, %v384_v28  ;;  %v253_v38 = vld [vmem:[%s1222_s13 + $0x118] sm:$0xff]  ;;  %v388_v39 = vld [vmem:[%s1263_s16 + $0x68] sm:$0xff]  ;;  %v792_v41 = vpack.c.bf16 %v248_v35, %v246_v34  ;;  %v387_v43 = vld [vmem:[%s1263_s16 + $0x60] sm:$0xff] }
  0x6e   :  { %v390_v40 = vld [vmem:[%s1263_s16 + $0x78] sm:$0xff]  ;;  %v250_v45 = vld [vmem:[%s1222_s13 + $0x100] sm:$0xff]  ;;  %v252_v46 = vld [vmem:[%s1222_s13 + $0x110] sm:$0xff] }
  0x6f   :  { %733 = vmatpush1.bf16.msra.mxu0 %v732_v57  ;;  %v137_v57 = vld [vmem:[%s1167_s11 + $0x1e0] sm:$0xff]  ;;  %v838_v47 = vpack.c.bf16 %v390_v40, %v388_v39  ;;  %v389_v48 = vld [vmem:[%s1263_s16 + $0x70] sm:$0xff]  ;;  %v257_v50 = vld [vmem:[%s1222_s13 + $0x138] sm:$0xff]  ;;  %v796_v53 = vpack.c.bf16 %v252_v46, %v250_v45 }
  0x70   :  { %735 = vmatprep.subr.bf16.mxu0 %v734_v58  ;;  %v778_v58 = vpack.c.bf16 %v237_v52, %v235_v51  ;;  %v760_v5 = vpack.c.bf16 %v139_v62, %v137_v57  ;;  %v392_v51 = vld [vmem:[%s1263_s16 + $0x88] sm:$0xff]  ;;  %v394_v52 = vld [vmem:[%s1263_s16 + $0x98] sm:$0xff]  ;;  %v840_v54 = vpack.c.bf16 %v389_v48, %v387_v43  ;;  %v391_v55 = vld [vmem:[%s1263_s16 + $0x80] sm:$0xff] }
  0x71   :  { %v254_v57 = vld [vmem:[%s1222_s13 + $0x120] sm:$0xff]  ;;  %v842_v59 = vpack.c.bf16 %v394_v52, %v392_v51  ;;  %v393_v60 = vld [vmem:[%s1263_s16 + $0x90] sm:$0xff]  ;;  %v261_v62 = vld [vmem:[%s1222_s13 + $0x158] sm:$0xff] }
  0x72   :  { %779 = vmatprep.subr.bf16.mxu1 %v778_v58  ;;  %v256_v58 = vld [vmem:[%s1222_s13 + $0x130] sm:$0xff]  ;;  %v844_v3 = vpack.c.bf16 %v393_v60, %v391_v55  ;;  %v400_v13 = vld [vmem:[%s1263_s16 + $0xc8] sm:$0xff]  ;;  %v402_v14 = vld [vmem:[%s1263_s16 + $0xd8] sm:$0xff] }
  0x73   :  { %737 = vmatpush1.bf16.msra.mxu0 %v736_v63  ;;  %v239_v63 = vld [vmem:[%s1222_s13 + $0xa8] sm:$0xff]  ;;  %781 = vmatpush1.bf16.msra.mxu1 %v780_v4  ;;  %v800_v2 = vpack.c.bf16 %v256_v58, %v254_v57  ;;  %v395_v4 = vld [vmem:[%s1263_s16 + $0xa0] sm:$0xff]  ;;  %v260_v8 = vld [vmem:[%s1222_s13 + $0x150] sm:$0xff]  ;;  %v850_v21 = vpack.c.bf16 %v402_v14, %v400_v13 }
  0x74   :  { %739 = vmatprep.subr.bf16.mxu0 %v738_v1  ;;  %v241_v1 = vld [vmem:[%s1222_s13 + $0xb8] sm:$0xff]  ;;  %v401_v22 = vld [vmem:[%s1263_s16 + $0xd0] sm:$0xff]  ;;  %v403_v29 = vld [vmem:[%s1263_s16 + $0xe0] sm:$0xff] }
  0x75   :  { %v406_v26 = vld [vmem:[%s1263_s16 + $0xf8] sm:$0xff]  ;;  %v405_v34 = vld [vmem:[%s1263_s16 + $0xf0] sm:$0xff]  ;;  %v271_v35 = vld [vmem:[%s1222_s13 + $0x1a8] sm:$0xff] }
  0x76   :  { %v856_v39 = vpack.c.bf16 %v405_v34, %v403_v29  ;;  %v407_v40 = vld [vmem:[%s1263_s16 + $0x100] sm:$0xff]  ;;  %v272_v43 = vld [vmem:[%s1222_s13 + $0x1b0] sm:$0xff]  ;;  %v275_v46 = vld [vmem:[%s1222_s13 + $0x1c8] sm:$0xff] }
  0x77   :  { %741 = vmatpush1.bf16.msra.mxu0 %v740_v6  ;;  %v1267_v6 = vld [vmem:[#allocation9 + $0x8] sm:$0xff]  ;;  %v409_v45 = vld [vmem:[%s1263_s16 + $0x110] sm:$0xff]  ;;  %v411_v52 = vld [vmem:[%s1263_s16 + $0x120] sm:$0xff] }
  0x78   :  { %743 = vmatprep.subr.bf16.mxu0 %v742_v7  ;;  %v782_v7 = vpack.c.bf16 %v241_v1, %v239_v63  ;;  %v440_v20 = vcombine.high %v1267_v6, %v1267_v6  ;;  %v396_v63 = vld [vmem:[%s1263_s16 + $0xa8] sm:$0xff]  ;;  %v398_v1 = vld [vmem:[%s1263_s16 + $0xb8] sm:$0xff]  ;;  %v860_v51 = vpack.c.bf16 %v409_v45, %v407_v40  ;;  %v276_v55 = vld [vmem:[%s1222_s13 + $0x1d0] sm:$0xff] }
  0x79   :  { %v846_v9 = vpack.c.bf16 %v398_v1, %v396_v63  ;;  %v412_v48 = vld [vmem:[%s1263_s16 + $0x128] sm:$0xff]  ;;  %v413_v57 = vld [vmem:[%s1263_s16 + $0x130] sm:$0xff]  ;;  %v426_v13 = vld [vmem:[%s1263_s16 + $0x198] sm:$0xff] }
  0x7a   :  { %783 = vmatprep.subr.bf16.mxu1 %v782_v7  ;;  %v258_v7 = vld [vmem:[%s1222_s13 + $0x140] sm:$0xff]  ;;  %v279_v58 = vld [vmem:[%s1222_s13 + $0x1e8] sm:$0xff]  ;;  %v864_v63 = vpack.c.bf16 %v413_v57, %v411_v52  ;;  %v433_v29 = vld [vmem:[%s1263_s16 + $0x1d0] sm:$0xff] }
  0x7b   :  { %745 = vmatpush1.bf16.msra.mxu0 %v744_v18  ;;  %v828_v18 = vpack.c.bf16 %v377_v12, %v375_v11  ;;  %785 = vmatpush1.bf16.msra.mxu1 %v784_v17  ;;  %v263_v11 = vld [vmem:[%s1222_s13 + $0x168] sm:$0xff]  ;;  %v265_v12 = vld [vmem:[%s1222_s13 + $0x178] sm:$0xff]  ;;  %v804_v15 = vpack.c.bf16 %v260_v8, %v258_v7  ;;  %v399_v17 = vld [vmem:[%s1263_s16 + $0xc0] sm:$0xff] }
  0x7c   :  { %747 = vmatprep.subr.bf16.mxu0 %v746_v24  ;;  %v381_v24 = vld [vmem:[%s1263_s16 + $0x30] sm:$0xff]  ;;  %787 = vmatprep.subr.bf16.mxu1 %v786_v25  ;;  %v404_v25 = vld [vmem:[%s1263_s16 + $0xe8] sm:$0xff]  ;;  %v852_v28 = vpack.c.bf16 %v401_v22, %v399_v17  ;;  %v422_v7 = vld [vmem:[%s1263_s16 + $0x178] sm:$0xff] }
  0x7d   :  { %v832_v31 = vpack.c.bf16 %v381_v24, %v379_v19  ;;  %v262_v19 = vld [vmem:[%s1222_s13 + $0x160] sm:$0xff]  ;;  %v269_v24 = vld [vmem:[%s1222_s13 + $0x198] sm:$0xff]  ;;  %v416_v60 = vld [vmem:[%s1263_s16 + $0x148] sm:$0xff] }
  0x7e   :  { %v425_v17 = vld [vmem:[%s1263_s16 + $0x190] sm:$0xff]  ;;  %v427_v22 = vld [vmem:[%s1263_s16 + $0x1a0] sm:$0xff]  ;;  %v527_v52 = vld [vmem:[%s1377_s19 + $0x58] sm:$0xff] }
  0x7f   :  { %749 = vmatpush1.bf16.msra.mxu0 %v748_v32  ;;  %v383_v32 = vld [vmem:[%s1263_s16 + $0x40] sm:$0xff]  ;;  %789 = vmatpush1.bf16.msra.mxu1 %v788_v30  ;;  %v529_v57 = vld [vmem:[%s1377_s19 + $0x68] sm:$0xff] }
  0x80   :  { %751 = vmatprep.subr.bf16.mxu0 %v750_v37  ;;  %v385_v37 = vld [vmem:[%s1263_s16 + $0x50] sm:$0xff]  ;;  %791 = vmatprep.subr.bf16.mxu1 %v790_v33  ;;  %v854_v33 = vpack.c.bf16 %v406_v26, %v404_v25  ;;  %v434_v25 = vld [vmem:[%s1263_s16 + $0x1d8] sm:$0xff]  ;;  %v435_v34 = vld [vmem:[%s1263_s16 + $0x1e0] sm:$0xff] }
  0x81   :  { %v836_v42 = vpack.c.bf16 %v385_v37, %v383_v32  ;;  %v268_v32 = vld [vmem:[%s1222_s13 + $0x190] sm:$0xff]  ;;  %v408_v37 = vld [vmem:[%s1263_s16 + $0x108] sm:$0xff] }
  0x83   :  { %753 = vmatpush1.bf16.msra.mxu0 %v752_v44  ;;  %793 = vmatpush1.bf16.msra.mxu1 %v792_v41 }
  0x84   :  { %755 = vmatprep.subr.bf16.mxu0 %v754_v49  ;;  %v255_v49 = vld [vmem:[%s1222_s13 + $0x128] sm:$0xff] }
  0x87   :  { %757 = vmatpush1.bf16.msra.mxu0 %v756_v56  ;;  %v798_v56 = vpack.c.bf16 %v257_v50, %v255_v49  ;;  %v414_v49 = vld [vmem:[%s1263_s16 + $0x138] sm:$0xff] }
  0x88   :  { %759 = vmatprep.subr.bf16.mxu0 %v758_v61  ;;  %v259_v61 = vld [vmem:[%s1222_s13 + $0x148] sm:$0xff] }
  0x8b   :  { %761 = vmatpush1.bf16.msra.mxu0 %v760_v5  ;;  %v802_v5 = vpack.c.bf16 %v261_v62, %v259_v61  ;;  %v418_v61 = vld [vmem:[%s1263_s16 + $0x158] sm:$0xff] }
  0x8c   :  { %827 = vmatprep.subr.bf16.mxu0 %v826_v10  ;;  %v397_v10 = vld [vmem:[%s1263_s16 + $0xb0] sm:$0xff] }
  0x8d   :  { %v848_v16 = vpack.c.bf16 %v397_v10, %v395_v4  ;;  %v417_v4 = vld [vmem:[%s1263_s16 + $0x150] sm:$0xff]  ;;  %v419_v10 = vld [vmem:[%s1263_s16 + $0x160] sm:$0xff] }
  0x8e   :  { %209 = vmatmul.mubr.f32.vlgmr.msra.gmra.mrb[0].mxu0 %v1163_v0  ;;  %v251_v0 = vld [vmem:[%s1222_s13 + $0x108] sm:$0xff] }
  0x8f   :  { %829 = vmatpush1.bf16.msra.mxu0 %v828_v18  ;;  %506 = vmatprep.mubr.f32.mxu0 %v440_v20  ;;  %v794_v44 = vpack.c.bf16 %v253_v38, %v251_v0  ;;  %v806_v18 = vpack.c.bf16 %v265_v12, %v263_v11  ;;  %v264_v20 = vld [vmem:[%s1222_s13 + $0x170] sm:$0xff]  ;;  %v410_v0 = vld [vmem:[%s1263_s16 + $0x118] sm:$0xff]  ;;  %v424_v12 = vld [vmem:[%s1263_s16 + $0x188] sm:$0xff] }
  0x90   :  { %831 = vmatprep.subr.bf16.mxu0 %v830_v23  ;;  %v267_v23 = vld [vmem:[%s1222_s13 + $0x188] sm:$0xff]  ;;  %v808_v27 = vpack.c.bf16 %v264_v20, %v262_v19  ;;  %v421_v11 = vld [vmem:[%s1263_s16 + $0x170] sm:$0xff]  ;;  %v430_v19 = vld [vmem:[%s1263_s16 + $0x1b8] sm:$0xff] }
  0x91   :  { %795 = vmatprep.subr.bf16.mxu1 %v794_v44  ;;  %v810_v30 = vpack.c.bf16 %v269_v24, %v267_v23  ;;  %v858_v44 = vpack.c.bf16 %v410_v0, %v408_v37  ;;  %v872_v14 = vpack.c.bf16 %v421_v11, %v419_v10  ;;  %v429_v23 = vld [vmem:[%s1263_s16 + $0x1b0] sm:$0xff]  ;;  %v432_v24 = vld [vmem:[%s1263_s16 + $0x1c8] sm:$0xff]  ;;  %v278_v37 = vld [vmem:[%s1222_s13 + $0x1e0] sm:$0xff] }
  0x92   :  { %797 = vmatpush1.bf16.msra.mxu1 %v796_v53  ;;  %v880_v26 = vpack.c.bf16 %v429_v23, %v427_v22  ;;  %v280_v0 = vld [vmem:[%s1222_s13 + $0x1f0] sm:$0xff]  ;;  %v536_v11 = vld [vmem:[%s1377_s19 + $0xa0] sm:$0xff] }
  0x93   :  { %833 = vmatpush1.bf16.msra.mxu0 %v832_v31  ;;  %799 = vmatprep.subr.bf16.mxu1 %v798_v56  ;;  %v266_v31 = vld [vmem:[%s1222_s13 + $0x180] sm:$0xff]  ;;  %v862_v56 = vpack.c.bf16 %v414_v49, %v412_v48 }
  0x94   :  { %835 = vmatprep.subr.bf16.mxu0 %v834_v36  ;;  %v273_v36 = vld [vmem:[%s1222_s13 + $0x1b8] sm:$0xff]  ;;  %v812_v38 = vpack.c.bf16 %v268_v32, %v266_v31  ;;  %v520_v49 = vld [vmem:[%s1377_s19 + $0x20] sm:$0xff] }
  0x95   :  { %v814_v41 = vpack.c.bf16 %v273_v36, %v271_v35  ;;  %v438_v31 = vld [vmem:[%s1263_s16 + $0x1f8] sm:$0xff]  ;;  %v437_v35 = vld [vmem:[%s1263_s16 + $0x1f0] sm:$0xff]  ;;  %v544_v23 = vld [vmem:[%s1377_s19 + $0xe0] sm:$0xff] }
  0x96   :  { %801 = vmatpush1.bf16.msra.mxu1 %v800_v2  ;;  %v866_v2 = vpack.c.bf16 %v418_v61, %v416_v60  ;;  %v888_v36 = vpack.c.bf16 %v437_v35, %v435_v34  ;;  %v528_v61 = vld [vmem:[%s1377_s19 + $0x60] sm:$0xff] }
  0x97   :  { %837 = vmatpush1.bf16.msra.mxu0 %v836_v42  ;;  %803 = vmatprep.subr.bf16.mxu1 %v802_v5  ;;  %v270_v42 = vld [vmem:[%s1222_s13 + $0x1a0] sm:$0xff]  ;;  %v420_v5 = vld [vmem:[%s1263_s16 + $0x168] sm:$0xff] }
  0x98   :  { %839 = vmatprep.subr.bf16.mxu0 %v838_v47  ;;  %v277_v47 = vld [vmem:[%s1222_s13 + $0x1d8] sm:$0xff]  ;;  %v816_v50 = vpack.c.bf16 %v272_v43, %v270_v42  ;;  %v518_v42 = vld [vmem:[%s1377_s19 + $0x10] sm:$0xff]  ;;  %v521_v43 = vld [vmem:[%s1377_s19 + $0x28] sm:$0xff] }
  0x99   :  { %v818_v53 = vpack.c.bf16 %v277_v47, %v275_v46  ;;  %v552_v35 = vld [vmem:[%s1377_s19 + $0x120] sm:$0xff] }
  0x9a   :  { %805 = vmatpush1.bf16.msra.mxu1 %v804_v15  ;;  %v874_v15 = vpack.c.bf16 %v426_v13, %v424_v12  ;;  %v538_v12 = vld [vmem:[%s1377_s19 + $0xb0] sm:$0xff]  ;;  %v541_v13 = vld [vmem:[%s1377_s19 + $0xc8] sm:$0xff] }
  0x9b   :  { %841 = vmatpush1.bf16.msra.mxu0 %v840_v54  ;;  %807 = vmatprep.subr.bf16.mxu1 %v806_v18  ;;  %v274_v54 = vld [vmem:[%s1222_s13 + $0x1c0] sm:$0xff]  ;;  %v428_v18 = vld [vmem:[%s1263_s16 + $0x1a8] sm:$0xff] }
  0x9c   :  { %843 = vmatprep.subr.bf16.mxu0 %v842_v59  ;;  %v281_v59 = vld [vmem:[%s1222_s13 + $0x1f8] sm:$0xff]  ;;  %v820_v62 = vpack.c.bf16 %v276_v55, %v274_v54  ;;  %v524_v55 = vld [vmem:[%s1377_s19 + $0x40] sm:$0xff] }
  0x9d   :  { %v822_v1 = vpack.c.bf16 %v281_v59, %v279_v58  ;;  %v531_v58 = vld [vmem:[%s1377_s19 + $0x78] sm:$0xff] }
  0x9e   :  { %809 = vmatpush1.bf16.msra.mxu1 %v808_v27  ;;  %v882_v27 = vpack.c.bf16 %v434_v25, %v432_v24  ;;  %v902_v60 = vpack.c.bf16 %v531_v58, %v529_v57  ;;  %v546_v24 = vld [vmem:[%s1377_s19 + $0xf0] sm:$0xff]  ;;  %v549_v25 = vld [vmem:[%s1377_s19 + $0x108] sm:$0xff]  ;;  %v568_v57 = vld [vmem:[%s1377_s19 + $0x1a0] sm:$0xff] }
  0x9f   :  { %845 = vmatpush1.bf16.msra.mxu0 %v844_v3  ;;  %811 = vmatprep.subr.bf16.mxu1 %v810_v30  ;;  %v415_v3 = vld [vmem:[%s1263_s16 + $0x140] sm:$0xff]  ;;  %v436_v30 = vld [vmem:[%s1263_s16 + $0x1e8] sm:$0xff]  ;;  %v570_v58 = vld [vmem:[%s1377_s19 + $0x1b0] sm:$0xff] }
  0xa0   :  { %847 = vmatprep.subr.bf16.mxu0 %v846_v9  ;;  %v868_v8 = vpack.c.bf16 %v417_v4, %v415_v3  ;;  %v870_v9 = vpack.c.bf16 %v422_v7, %v420_v5  ;;  %v532_v4 = vld [vmem:[%s1377_s19 + $0x80] sm:$0xff]  ;;  %v534_v5 = vld [vmem:[%s1377_s19 + $0x90] sm:$0xff]  ;;  %v537_v7 = vld [vmem:[%s1377_s19 + $0xa8] sm:$0xff] }
  0xa2   :  { %813 = vmatpush1.bf16.msra.mxu1 %v812_v38  ;;  %v824_v38 = vpack.c.bf16 %v280_v0, %v278_v37  ;;  %v557_v37 = vld [vmem:[%s1377_s19 + $0x148] sm:$0xff]  ;;  %v559_v0 = vld [vmem:[%s1377_s19 + $0x158] sm:$0xff] }
  0xa3   :  { %849 = vmatpush1.bf16.msra.mxu0 %v848_v16  ;;  %815 = vmatprep.subr.bf16.mxu1 %v814_v41  ;;  %v423_v16 = vld [vmem:[%s1263_s16 + $0x180] sm:$0xff] }
  0xa4   :  { %851 = vmatprep.subr.bf16.mxu0 %v850_v21  ;;  %v876_v20 = vpack.c.bf16 %v425_v17, %v423_v16  ;;  %v878_v21 = vpack.c.bf16 %v430_v19, %v428_v18  ;;  %v516_v41 = vld [vmem:[%s1377_s19] sm:$0xff]  ;;  %v542_v18 = vld [vmem:[%s1377_s19 + $0xd0] sm:$0xff]  ;;  %v545_v19 = vld [vmem:[%s1377_s19 + $0xe8] sm:$0xff] }
  0xa5   :  { %v892_v46 = vpack.c.bf16 %v518_v42, %v516_v41  ;;  %v540_v17 = vld [vmem:[%s1377_s19 + $0xc0] sm:$0xff]  ;;  %v561_v41 = vld [vmem:[%s1377_s19 + $0x168] sm:$0xff]  ;;  %v563_v42 = vld [vmem:[%s1377_s19 + $0x178] sm:$0xff] }
  0xa6   :  { %817 = vmatpush1.bf16.msra.mxu1 %v816_v50  ;;  %v522_v50 = vld [vmem:[%s1377_s19 + $0x30] sm:$0xff] }
  0xa7   :  { %853 = vmatpush1.bf16.msra.mxu0 %v852_v28  ;;  %819 = vmatprep.subr.bf16.mxu1 %v818_v53  ;;  %v431_v28 = vld [vmem:[%s1263_s16 + $0x1c0] sm:$0xff]  ;;  %v896_v53 = vpack.c.bf16 %v522_v50, %v520_v49 }
  0xa8   :  { %855 = vmatprep.subr.bf16.mxu0 %v854_v33  ;;  %v884_v32 = vpack.c.bf16 %v433_v29, %v431_v28  ;;  %v886_v33 = vpack.c.bf16 %v438_v31, %v436_v30  ;;  %v548_v29 = vld [vmem:[%s1377_s19 + $0x100] sm:$0xff]  ;;  %v550_v30 = vld [vmem:[%s1377_s19 + $0x110] sm:$0xff]  ;;  %v553_v31 = vld [vmem:[%s1377_s19 + $0x128] sm:$0xff] }
  0xaa   :  { %821 = vmatpush1.bf16.msra.mxu1 %v820_v62  ;;  %v530_v62 = vld [vmem:[%s1377_s19 + $0x70] sm:$0xff] }
  0xab   :  { %857 = vmatpush1.bf16.msra.mxu0 %v856_v39  ;;  %823 = vmatprep.subr.bf16.mxu1 %v822_v1  ;;  %v517_v39 = vld [vmem:[%s1377_s19 + $0x8] sm:$0xff]  ;;  %v535_v1 = vld [vmem:[%s1377_s19 + $0x98] sm:$0xff] }
  0xac   :  { %859 = vmatprep.subr.bf16.mxu0 %v858_v44  ;;  %v523_v44 = vld [vmem:[%s1377_s19 + $0x38] sm:$0xff] }
  0xad   :  { %v894_v48 = vpack.c.bf16 %v523_v44, %v521_v43  ;;  %v934_v44 = vpack.c.bf16 %v563_v42, %v561_v41 }
  0xae   :  { %825 = vmatpush1.bf16.msra.mxu1 %v824_v38 }
  0xaf   :  { %861 = vmatpush1.bf16.msra.mxu0 %v860_v51  ;;  %v525_v51 = vld [vmem:[%s1377_s19 + $0x48] sm:$0xff] }
  0xb0   :  { %863 = vmatprep.subr.bf16.mxu0 %v862_v56  ;;  %v898_v54 = vpack.c.bf16 %v527_v52, %v525_v51  ;;  %v526_v56 = vld [vmem:[%s1377_s19 + $0x50] sm:$0xff]  ;;  %v564_v51 = vld [vmem:[%s1377_s19 + $0x180] sm:$0xff] }
  0xb1   :  { %v900_v59 = vpack.c.bf16 %v526_v56, %v524_v55  ;;  %v566_v52 = vld [vmem:[%s1377_s19 + $0x190] sm:$0xff] }
  0xb2   :  { %v940_v55 = vpack.c.bf16 %v566_v52, %v564_v51 }
  0xb3   :  { %865 = vmatpush1.bf16.msra.mxu0 %v864_v63  ;;  %v533_v63 = vld [vmem:[%s1377_s19 + $0x88] sm:$0xff] }
  0xb4   :  { %867 = vmatprep.subr.bf16.mxu0 %v866_v2  ;;  %v904_v2 = vpack.c.bf16 %v530_v62, %v528_v61  ;;  %v906_v3 = vpack.c.bf16 %v535_v1, %v533_v63  ;;  %v944_v61 = vpack.c.bf16 %v570_v58, %v568_v57  ;;  %v572_v63 = vld [vmem:[%s1377_s19 + $0x1c0] sm:$0xff]  ;;  %v574_v1 = vld [vmem:[%s1377_s19 + $0x1d0] sm:$0xff] }
  0xb7   :  { %869 = vmatpush1.bf16.msra.mxu0 %v868_v8  ;;  %v539_v8 = vld [vmem:[%s1377_s19 + $0xb8] sm:$0xff] }
  0xb8   :  { %871 = vmatprep.subr.bf16.mxu0 %v870_v9  ;;  %v908_v9 = vpack.c.bf16 %v534_v5, %v532_v4  ;;  %v910_v10 = vpack.c.bf16 %v539_v8, %v537_v7  ;;  %v948_v4 = vpack.c.bf16 %v574_v1, %v572_v63  ;;  %v576_v7 = vld [vmem:[%s1377_s19 + $0x1e0] sm:$0xff]  ;;  %v578_v8 = vld [vmem:[%s1377_s19 + $0x1f0] sm:$0xff] }
  0xbb   :  { %873 = vmatpush1.bf16.msra.mxu0 %v872_v14  ;;  %v543_v14 = vld [vmem:[%s1377_s19 + $0xd8] sm:$0xff] }
  0xbc   :  { %875 = vmatprep.subr.bf16.mxu0 %v874_v15  ;;  %v912_v15 = vpack.c.bf16 %v538_v12, %v536_v11  ;;  %v914_v16 = vpack.c.bf16 %v543_v14, %v541_v13 }
  0xbf   :  { %877 = vmatpush1.bf16.msra.mxu0 %v876_v20  ;;  %v547_v20 = vld [vmem:[%s1377_s19 + $0xf8] sm:$0xff] }
  0xc0   :  { %879 = vmatprep.subr.bf16.mxu0 %v878_v21  ;;  %v916_v21 = vpack.c.bf16 %v542_v18, %v540_v17  ;;  %v918_v22 = vpack.c.bf16 %v547_v20, %v545_v19 }
  0xc3   :  { %881 = vmatpush1.bf16.msra.mxu0 %v880_v26  ;;  %v551_v26 = vld [vmem:[%s1377_s19 + $0x118] sm:$0xff] }
  0xc4   :  { %883 = vmatprep.subr.bf16.mxu0 %v882_v27  ;;  %v920_v27 = vpack.c.bf16 %v546_v24, %v544_v23  ;;  %v922_v28 = vpack.c.bf16 %v551_v26, %v549_v25 }
  0xc7   :  { %885 = vmatpush1.bf16.msra.mxu0 %v884_v32  ;;  %v555_v32 = vld [vmem:[%s1377_s19 + $0x138] sm:$0xff] }
  0xc8   :  { %887 = vmatprep.subr.bf16.mxu0 %v886_v33  ;;  %v924_v33 = vpack.c.bf16 %v550_v30, %v548_v29  ;;  %v926_v34 = vpack.c.bf16 %v555_v32, %v553_v31 }
  0xcb   :  { %889 = vmatpush1.bf16.msra.mxu0 %v888_v36  ;;  %v554_v36 = vld [vmem:[%s1377_s19 + $0x130] sm:$0xff] }
  0xcc   :  { %v928_v38 = vpack.c.bf16 %v554_v36, %v552_v35 }
  0xce   :  { %507 = vmatmul.mubr.f32.vlgmr.msra.gmra.mrb[2].mxu0 %v1267_v6  ;;  %v519_v6 = vld [vmem:[%s1377_s19 + $0x18] sm:$0xff] }
  0xcf   :  { %v890_v40 = vpack.c.bf16 %v519_v6, %v517_v39  ;;  %v930_v39 = vpack.c.bf16 %v559_v0, %v557_v37  ;;  %v556_v6 = vld [vmem:[%s1377_s19 + $0x140] sm:$0xff] }
  0xd1   :  { %891 = vmatprep.subr.bf16.mxu1 %v890_v40  ;;  %v558_v40 = vld [vmem:[%s1377_s19 + $0x150] sm:$0xff] }
  0xd2   :  { %v932_v43 = vpack.c.bf16 %v558_v40, %v556_v6 }
 0x161   :  { %v210_v45 = vpop.f32.mrb[0].mxu0 }
 0x162   :  { %v212_v47 = vpop.f32.mrb[1].mxu0 }
 0x163   :  { %346 = vmatprep.mubr.f32.mxu1 %v212_v47  ;;  %v565_v47 = vld [vmem:[%s1377_s19 + $0x188] sm:$0xff] }
 0x164   :  { %347 = vmatmul.mubr.f32.vlgmr.msra.gmra.mrb[0].mxu1 %v210_v45  ;;  %v560_v45 = vld [vmem:[%s1377_s19 + $0x160] sm:$0xff] }
 0x165   :  { %893 = vmatpush1.bf16.msra.mxu1 %v892_v46  ;;  %v562_v46 = vld [vmem:[%s1377_s19 + $0x170] sm:$0xff] }
 0x166   :  { %895 = vmatprep.subr.bf16.mxu1 %v894_v48  ;;  %v567_v48 = vld [vmem:[%s1377_s19 + $0x198] sm:$0xff]  ;;  %v936_v49 = vpack.c.bf16 %v562_v46, %v560_v45 }
 0x167   :  { %v938_v50 = vpack.c.bf16 %v567_v48, %v565_v47 }
 0x169   :  { %897 = vmatpush1.bf16.msra.mxu1 %v896_v53  ;;  %v569_v53 = vld [vmem:[%s1377_s19 + $0x1a8] sm:$0xff] }
 0x16a   :  { %899 = vmatprep.subr.bf16.mxu1 %v898_v54  ;;  %v571_v54 = vld [vmem:[%s1377_s19 + $0x1b8] sm:$0xff] }
 0x16b   :  { %v942_v56 = vpack.c.bf16 %v571_v54, %v569_v53 }
 0x16d   :  { %901 = vmatpush1.bf16.msra.mxu1 %v900_v59  ;;  %v573_v59 = vld [vmem:[%s1377_s19 + $0x1c8] sm:$0xff] }
 0x16e   :  { %903 = vmatprep.subr.bf16.mxu1 %v902_v60  ;;  %v575_v60 = vld [vmem:[%s1377_s19 + $0x1d8] sm:$0xff] }
 0x16f   :  { %v946_v62 = vpack.c.bf16 %v575_v60, %v573_v59 }
 0x171   :  { %905 = vmatpush1.bf16.msra.mxu1 %v904_v2  ;;  %v577_v2 = vld [vmem:[%s1377_s19 + $0x1e8] sm:$0xff] }
 0x172   :  { %907 = vmatprep.subr.bf16.mxu1 %v906_v3  ;;  %v579_v3 = vld [vmem:[%s1377_s19 + $0x1f8] sm:$0xff] }
 0x173   :  { %v950_v5 = vpack.c.bf16 %v579_v3, %v577_v2 }
 0x175   :  { %909 = vmatpush1.bf16.msra.mxu1 %v908_v9  ;;  %v952_v9 = vpack.c.bf16 %v578_v8, %v576_v7 }
 0x176   :  { %911 = vmatprep.subr.bf16.mxu1 %v910_v10 }
 0x179   :  { %913 = vmatpush1.bf16.msra.mxu1 %v912_v15 }
 0x17a   :  { %915 = vmatprep.subr.bf16.mxu1 %v914_v16 }
 0x17d   :  { %917 = vmatpush1.bf16.msra.mxu1 %v916_v21 }
 0x17e   :  { %919 = vmatprep.subr.bf16.mxu1 %v918_v22 }
 0x181   :  { %921 = vmatpush1.bf16.msra.mxu1 %v920_v27 }
 0x182   :  { %923 = vmatprep.subr.bf16.mxu1 %v922_v28 }
 0x185   :  { %925 = vmatpush1.bf16.msra.mxu1 %v924_v33 }
 0x186   :  { %927 = vmatprep.subr.bf16.mxu1 %v926_v34 }
 0x189   :  { %929 = vmatpush1.bf16.msra.mxu1 %v928_v38 }
 0x18a   :  { %931 = vmatprep.subr.bf16.mxu1 %v930_v39 }
 0x18d   :  { %933 = vmatpush1.bf16.msra.mxu1 %v932_v43 }
 0x18e   :  { %935 = vmatprep.subr.bf16.mxu1 %v934_v44 }
 0x191   :  { %937 = vmatpush1.bf16.msra.mxu1 %v936_v49 }
 0x192   :  { %939 = vmatprep.subr.bf16.mxu1 %v938_v50 }
 0x195   :  { %941 = vmatpush1.bf16.msra.mxu1 %v940_v55 }
 0x196   :  { %943 = vmatprep.subr.bf16.mxu1 %v942_v56 }
 0x199   :  { %945 = vmatpush1.bf16.msra.mxu1 %v944_v61 }
 0x19a   :  { %947 = vmatprep.subr.bf16.mxu1 %v946_v62 }
 0x19d   :  { %949 = vmatpush1.bf16.msra.mxu1 %v948_v4 }
 0x19e   :  { %951 = vmatprep.subr.bf16.mxu1 %v950_v5 }
 0x1a1   :  { %v508_v10 = vpop.f32.mrb[2].mxu0  ;;  %953 = vmatpush1.bf16.msra.mxu1 %v952_v9 }
 0x1a2   :  { %v510_v11 = vpop.f32.mrb[3].mxu0 }
 0x1a3   :  { %644 = vmatprep.mubr.f32.mxu1 %v510_v11 }
 0x1a4   :  { %645 = vmatmul.mubr.f32.vlgmr.msra.gmra.mrb[2].mxu1 %v508_v10 }
 0x237   :  { %v348_v12 = vpop.f32.mrb[0].mxu1 }
 0x238   :  { %v350_v13 = vpop.f32.mrb[1].mxu1 }
 0x239   :  { %v355_v14 = vcombine.low %v348_v12, %v350_v13 }
 0x23b   :  { %357 = vst [vmem:[#allocation10] sm:$0xff] %v355_v14 }
 0x277   :  { %v646_v15 = vpop.f32.mrb[2].mxu1 }
 0x278   :  { %v648_v16 = vpop.f32.mrb[3].mxu1 }
 0x279   :  { %v653_v17 = vcombine.low %v646_v15, %v648_v16 }
 0x27b   :  { %656 = vst [vmem:[#allocation10 + $0x8] sm:$0xff] %v653_v17 }
 0x27c   :  { %1052 = shalt.err (!%p1049_p3)
}
 0x27d   :  { %s1053_s24 = scalar_lea.hbm %s1462_s4, 256 }
 0x27e   :  { %p1054_p4 = scmp.ne.s32.totalorder %s1462_s4, %s1053_s24  ;;  %p1057_p5 = scmp.lt.u32.totalorder %s1053_s24, %s1462_s4 }
 0x280   :  { %p1059_p6 = pnand %p1057_p5, %p1054_p4 }
 0x282   :  { %1062 = shalt.err (!%p1059_p6)
}
 0x283   :  { %668 = dma.vmem_to_hbm [thread:$0]  %s663_s21, 256, %s1462_s4, [#allocation6], %s1077_s1, %s1077_s1, %s1078_s28  }
 0x284   :  { %1069 = dma.done.wait [#allocation6], 256  }
 0x285   :  { %1070 = vsyncadd [#allocation6], 4294967040 }
 0x286   :  { %672 = vsyncpa [#allocation5], 1 }
 0x287   :  { %673 = vsyncpa [#allocation8], 1 }
 0x288   :  { %674 = vsyncpa [#allocation6], 1 }

</bundles_post_ra>
